<compile_context>
chip_gen: v7x
topology: tpu7x:2x2x1
jax: 0.10.0
libtpu: 0.0.40
codegen_flags: <defaults>
</compile_context>

<pallas_src>
import functools

import jax
import jax.numpy as jnp
from jax.experimental import pallas as pl
from jax.experimental.pallas import tpu as pltpu


def _mean_seq_kernel_single(x_ref, o_ref, *, inv_s):
    # Whole sequence in one tile: no scratch accumulator, no reduction axis.
    o_ref[...] = (
        jnp.sum(x_ref[...], axis=1, dtype=jnp.float32) * inv_s
    ).astype(o_ref.dtype)


def _mean_seq_kernel(x_ref, o_ref, acc_ref, *, inv_s, s_total, ts):
    # x_ref: (TB, TS, H) input tile; o_ref: (TB, H) output tile (resident
    # across the S reduction axis); acc_ref: (TB, H) f32 scratch accumulator.
    k = pl.program_id(1)

    @pl.when(k == 0)
    def _():
        acc_ref[...] = jnp.zeros_like(acc_ref)

    x = x_ref[...]
    if s_total % ts != 0:
        # Last S tile overruns the array; out-of-bounds contents are
        # unspecified, so zero-mask them before summing.
        s_idx = jax.lax.broadcasted_iota(jnp.int32, x.shape, 1)
        x = jnp.where(k * ts + s_idx < s_total, x, jnp.zeros_like(x))

    acc_ref[...] += jnp.sum(x, axis=1, dtype=jnp.float32)

    @pl.when(k == pl.num_programs(1) - 1)
    def _():
        o_ref[...] = (acc_ref[...] * inv_s).astype(o_ref.dtype)


def _round_up(n, m):
    return ((n + m - 1) // m) * m


def _pick_batch_tile(B, S, H, itemsize, budget):
    """Returns (tb, pad_batch). tb divides the (possibly padded) batch."""
    if B % 8 == 0:
        for t in (64, 32, 16, 8):
            if B % t == 0:
                return t, False
    # B not sublane-aligned: take the full batch as one tile (legal because the
    # output block dim then equals the full array dim) as long as a minimal
    # sequence tile still fits the VMEM budget — this avoids any HBM pad copy.
    if B * min(S, 8) * H * itemsize <= budget:
        return B, False
    # Rare fallback (huge, misaligned B): pad the batch to a multiple of 8.
    return 8, True


def avg_pooling_state(x, *, vmem_budget_bytes=4 * 1024 * 1024):
    """Pallas TPU implementation of torch.mean(x, 1) for x of shape (B, S, H)."""
    B, S, H = x.shape
    dtype = x.dtype
    itemsize = jnp.dtype(dtype).itemsize

    tb, pad_batch = _pick_batch_tile(B, S, H, itemsize, vmem_budget_bytes)

    xp, Bp = x, B
    if pad_batch:
        Bp = _round_up(B, 8)
        xp = jnp.pad(x, ((0, Bp - B), (0, 0), (0, 0)))

    # Sequence tile: bound each (double-buffered) input buffer to ~budget bytes
    # so pipelining survives the v5e scoped default and v7x's 64 MiB VMEM.
    ts_budget = max(1, vmem_budget_bytes // (tb * H * itemsize))
    if S <= ts_budget:
        ts = S                          # full S: always a legal block extent
    else:
        ts = max(8, (ts_budget // 8) * 8)

    nb = Bp // tb                       # exact by construction
    ns = pl.cdiv(S, ts)

    if ns == 1:
        kernel = functools.partial(_mean_seq_kernel_single, inv_s=1.0 / S)
        grid = (nb,)
        in_specs = [pl.BlockSpec((tb, S, H), lambda i: (i, 0, 0))]
        out_specs = pl.BlockSpec((tb, H), lambda i: (i, 0))
        scratch_shapes = []
        dim_sem = ("parallel",)
    else:
        kernel = functools.partial(
            _mean_seq_kernel, inv_s=1.0 / S, s_total=S, ts=ts)
        grid = (nb, ns)                 # batch parallel, S reduction last
        in_specs = [pl.BlockSpec((tb, ts, H), lambda i, k: (i, k, 0))]
        out_specs = pl.BlockSpec((tb, H), lambda i, k: (i, 0))
        scratch_shapes = [pltpu.VMEM((tb, H), jnp.float32)]
        dim_sem = ("parallel", "arbitrary")

    out = pl.pallas_call(
        kernel,
        out_shape=jax.ShapeDtypeStruct((Bp, H), dtype),
        grid_spec=pltpu.PrefetchScalarGridSpec(
            num_scalar_prefetch=0,
            grid=grid,
            in_specs=in_specs,
            out_specs=out_specs,
            scratch_shapes=scratch_shapes,
        ),
        compiler_params=pltpu.CompilerParams(
            dimension_semantics=dim_sem,
            vmem_limit_bytes=32 * 1024 * 1024,
        ),
    )(xp)

    return out if Bp == B else out[:B]


if __name__ == "__main__":
    # AvgPoolingState(input_size, output_size) has no parameters; forward is
    # just a mean-reduction over dim 1.
    key = jax.random.PRNGKey(0)
    B, S, H = 2, 8, 32  # batch, seq, hidden
    x = jax.random.normal(key, (B, S, H), dtype=jnp.float32)

    out = avg_pooling_state(x)
    out = jax.block_until_ready(out)

    # Correctness check against plain JAX reference (== torch.mean(x, 1)).
    ref = jnp.mean(x, axis=1)
    assert out.shape == (B, H)
    assert jnp.allclose(out, ref, atol=1e-5, rtol=1e-5)

    print("KERNEL_OK")
</pallas_src>

<mosaic_0001>
module attributes {stable_mosaic.version = 11 : i64} {
  func.func @_mean_seq_kernel_single(%arg0: i32, %arg1: memref<2x8x32xf32, #tpu.memory_space<vmem>>, %arg2: memref<2x32xf32, #tpu.memory_space<vmem>>) attributes {dimension_semantics = [#tpu.dimension_semantics<parallel>], iteration_bounds = array<i64: 1>, scalar_prefetch = 0 : i64, scratch_operands = 0 : i64, tpu.core_type = #tpu.core_type<tc>, window_params = [{transform_indices = @transform_0, window_bounds = array<i64: 2, 8, 32>}, {transform_indices = @transform_1, window_bounds = array<i64: 2, 32>}]} {
    %c0 = arith.constant 0 : index
    %c0_0 = arith.constant 0 : index
    %c0_1 = arith.constant 0 : index
    %0 = vector.load %arg1[%c0, %c0_0, %c0_1] : memref<2x8x32xf32, #tpu.memory_space<vmem>>, vector<2x8x32xf32>
    %cst = arith.constant dense<0.000000e+00> : vector<2x32xf32>
    %1 = vector.multi_reduction <add>, %0, %cst [1] : vector<2x8x32xf32> to vector<2x32xf32>
    %cst_2 = arith.constant 1.250000e-01 : f32
    %2 = vector.broadcast %cst_2 : f32 to vector<2x32xf32>
    %3 = arith.mulf %1, %2 : vector<2x32xf32>
    %c0_3 = arith.constant 0 : index
    %c0_4 = arith.constant 0 : index
    %4 = vector.load %arg2[%c0_3, %c0_4] : memref<2x32xf32, #tpu.memory_space<vmem>>, vector<2x32xf32>
    tpu.vector_store %arg2[%c0_3, %c0_4], %3 {strides = array<i32>} : memref<2x32xf32, #tpu.memory_space<vmem>>, vector<2x32xf32>,
    return
  }
  func.func @transform_0(%arg0: i32) -> (i32, i32, i32) {
    %c0_i32 = arith.constant 0 : i32
    %c0_i32_0 = arith.constant 0 : i32
    %c0_i32_1 = arith.constant 0 : i32
    return %arg0, %c0_i32, %c0_i32_0 : i32, i32, i32
  }
  func.func @transform_1(%arg0: i32) -> (i32, i32) {
    %c0_i32 = arith.constant 0 : i32
    %c0_i32_0 = arith.constant 0 : i32
    return %arg0, %c0_i32 : i32, i32
  }
}

</mosaic_0001>

<bundles_post_ra>
// kernel: tpu_custom_call.1
= control target key start
LH: loop header
LB: loop body
LE: loop exit
PB: predicated region body
PF: predicated region fallthrough
CT: control target
= control target key end

     0   :  { %6 = vsyncpa [#allocation3], 0  ;;  %s154_s0 = inlined_call_operand.hbm [shape: f32[2,8,32], index: 0, kind: input, shape index: {}]   ;;  %s155_s1 = inlined_call_operand.hbm [shape: f32[2,32], index: 1, kind: output, shape index: {}]  }
   0x1   :  { %7 = vsyncpa [#allocation4], 0  ;;  %s116_s6 = smov [#allocation2]   ;;  %s68_s10 = scalar_lea.hbm %s154_s0, 256 }
   0x2   :  { %s13_s7 = sshll.u32 %s116_s6, 4  ;;  %p69_p0 = scmp.ne.s32.totalorder %s154_s0, %s68_s10  ;;  %s14_s7 = int_to_ptr.vmem [resolvable:$true] %s13_s7 }
   0x3   :  { %p72_p1 = scmp.lt.u32.totalorder %s68_s10, %s154_s0 }
   0x5   :  { %p74_p2 = pnand %p72_p1, %p69_p0 }
   0x7   :  { %77 = shalt.err (!%p74_p2)
}
   0x8   :  { %s78_s15 = scalar_lea.vmem %s14_s7, 256  ;;  %p83_p4 = scmp.lt.s32.totalorder %s14_s7, %s14_s7 }
   0x9   :  { %p79_p3 = scmp.ne.s32.totalorder %s14_s7, %s78_s15  ;;  %p84_p5 = scmp.lt.s32.totalorder %s78_s15, %s78_s15 }
   0xb   :  { %p85_p6 = por %p84_p5, %p83_p4 }
   0xd   :  { %p86_p7 = pnand %p85_p6, %p79_p3 }
   0xf   :  { %89 = shalt.err (!%p86_p7)
}
  0x10   :  { %s117_s16 = smov 128   ;;  %s118_s17 = smov 8  }
  0x11   :  { %19 = dma.hbm_to_vmem [thread:$0]  %s154_s0, 256, %s14_s7, [#allocation3], %s117_s16, %s117_s16, %s118_s17  }
  0x12   :  { %112 = dma.done.wait [#allocation3], 256  }
  0x13   :  { %113 = vsyncadd [#allocation3], 4294967040  ;;  %vm25_vm0 = vcmask 261120   ;;  %v23_v0 = vld [vmem:[#allocation2] sm:$0xff]  ;;  %v24_v1 = vld [vmem:[#allocation2 + $0x8] sm:$0xff]  ;;  %s119_s0 = smov [#allocation5]  }
  0x14   :  { %v26_v2 = vsel %vm25_vm0, %v23_v0, 0.0  ;;  %v33_v3 = vsel %vm25_vm0, %v24_v1, 0.0  ;;  %s55_s20 = sshll.u32 %s119_s0, 4  ;;  %vm44_vm1 = vcmask 1041409   ;;  %vm47_vm2 = vcmask 254976   ;;  %s56_s20 = int_to_ptr.vmem [resolvable:$true] %s55_s20 }
  0x15   :  { %v27_v4 = vrot.slane %v26_v2, 4  ;;  %v34_v5 = vrot.slane %v33_v3, 4  ;;  %s90_s21 = scalar_lea.vmem %s56_s20, 32  ;;  %p95_p9 = scmp.lt.s32.totalorder %s56_s20, %s56_s20 }
  0x16   :  { %p91_p8 = scmp.ne.s32.totalorder %s56_s20, %s90_s21  ;;  %p96_p10 = scmp.lt.s32.totalorder %s90_s21, %s90_s21 }
  0x17   :  { %v28_v6 = vadd.f32 %v27_v4, %v26_v2  ;;  %v35_v7 = vadd.f32 %v34_v5, %v33_v3 }
  0x18   :  { %p97_p11 = por %p96_p10, %p95_p9 }
  0x19   :  { %v29_v8 = vrot.slane %v28_v6, 2  ;;  %v36_v9 = vrot.slane %v35_v7, 2 }
  0x1a   :  { %p98_p12 = pnand %p97_p11, %p91_p8 }
  0x1b   :  { %v30_v10 = vadd.f32 %v29_v8, %v28_v6  ;;  %v37_v11 = vadd.f32 %v36_v9, %v35_v7 }
  0x1d   :  { %v31_v12 = vrot.slane %v30_v10, 1  ;;  %v38_v13 = vrot.slane %v37_v11, 1 }
  0x1f   :  { %v32_v14 = vadd.f32 %v31_v12, %v30_v10  ;;  %v39_v15 = vadd.f32 %v38_v13, %v37_v11 }
  0x21   :  { %v40_v16 = vmul.f32 0.125, %v32_v14  ;;  %v41_v17 = vmul.f32 0.125, %v39_v15 }
  0x23   :  { %v45_v18 = vsel %vm44_vm1, %v41_v17, %v40_v16 }
  0x24   :  { %48 = vst.msk [vmem:[#allocation5] sm:$0x3] %vm47_vm2, %v45_v18 }
  0x25   :  { %101 = shalt.err (!%p98_p12)
}
  0x26   :  { %s102_s24 = scalar_lea.hbm %s155_s1, 32 }
  0x27   :  { %p103_p13 = scmp.ne.s32.totalorder %s155_s1, %s102_s24  ;;  %p106_p0 = scmp.lt.u32.totalorder %s102_s24, %s155_s1 }
  0x29   :  { %p108_p1 = pnand %p106_p0, %p103_p13 }
  0x2b   :  { %111 = shalt.err (!%p108_p1)
}
  0x2c   :  { %58 = dma.vmem_to_hbm [thread:$0]  %s56_s20, 32, %s155_s1, [#allocation4]  }
  0x2d   :  { %114 = dma.done.wait [#allocation4], 32  }
  0x2e   :  { %115 = vsyncadd [#allocation4], 4294967264 }
  0x2f   :  { %62 = vsyncpa [#allocation3], 1 }
  0x30   :  { %63 = vsyncpa [#allocation4], 1 }

</bundles_post_ra>
